<compile_context>
chip_gen: v7x
topology: tpu7x:2x2x1
jax: 0.10.0
libtpu: 0.0.40
codegen_flags: <defaults>
</compile_context>

<pallas_src>
import functools

import jax
import jax.numpy as jnp
from jax.experimental import pallas as pl
from jax.experimental.pallas import tpu as pltpu


# ---------------------------------------------------------------------------
# Kernel 1: input-to-hidden projection for all timesteps at once.
#   x_ref: (tile_rows, I)   w_ref: (3, I, H)   b_ref: (3, 1, H)
#   o_ref: (3, tile_rows, H)   gates ordered [r, z, n] (torch GRU layout)
# ---------------------------------------------------------------------------
def _in_proj_kernel(x_ref, w_ref, b_ref, o_ref):
    x = x_ref[...]
    for k in range(3):  # static unroll over the 3 gates
        o_ref[k] = (
            jnp.dot(x, w_ref[k], preferred_element_type=jnp.float32) + b_ref[k]
        ).astype(o_ref.dtype)


def _pick_row_tile(rows, max_tile=512):
    """Largest multiple of 8 that divides `rows` (capped), else the full extent.

    Avoids any pad/unpad round-trip in HBM while keeping sublane-friendly tiles.
    """
    best = None
    t = 8
    while t <= min(rows, max_tile):
        if rows % t == 0:
            best = t
        t += 8
    return best if best is not None else rows


# ---------------------------------------------------------------------------
# Kernel 2: sequential GRU recurrence. grid=(T,), hidden resident in VMEM.
#   lens_ref: (B, 1) int32    maxlen_ref: (1, 1) int32
#   gx_ref:   (3, 1, B, H)    precomputed x-gates for this timestep
#   h0_ref:   (B, H)          whh_ref: (3, H, H)   bhh_ref: (3, 1, H)
#   out_ref:  (1, B, H)       hout_ref: (B, H)  (resident accumulator / final h)
# ---------------------------------------------------------------------------
def _gru_recurrence_kernel(lens_ref, maxlen_ref, gx_ref, h0_ref, whh_ref, bhh_ref,
                           out_ref, hout_ref):
    t = pl.program_id(0)

    @pl.when(t == 0)
    def _():
        hout_ref[...] = h0_ref[...].astype(jnp.float32)

    h_prev = hout_ref[...]                      # (B, H) f32, carried across steps

    gx_r = gx_ref[0, 0]                         # (B, H) each
    gx_z = gx_ref[1, 0]
    gx_n = gx_ref[2, 0]

    gh_r = jnp.dot(h_prev, whh_ref[0], preferred_element_type=jnp.float32) + bhh_ref[0]
    gh_z = jnp.dot(h_prev, whh_ref[1], preferred_element_type=jnp.float32) + bhh_ref[1]
    gh_n = jnp.dot(h_prev, whh_ref[2], preferred_element_type=jnp.float32) + bhh_ref[2]

    r = jax.nn.sigmoid(gx_r + gh_r)
    z = jax.nn.sigmoid(gx_z + gh_z)
    n = jnp.tanh(gx_n + r * gh_n)
    h_new = (1.0 - z) * n + z * h_prev

    valid = t < lens_ref[...]                   # (B, 1) bool: within this row's length?
    hout_ref[...] = jnp.where(valid, h_new, h_prev)   # freeze hidden past the length

    # pad_packed_sequence pads with 0 up to max(len); the module then appends a
    # 1e-07 tail for positions in [max(len), T).
    tail = jnp.where(t >= maxlen_ref[...], jnp.float32(1e-7), jnp.float32(0.0))  # (1,1)
    out_ref[0] = jnp.where(valid, h_new, tail).astype(out_ref.dtype)


# ---------------------------------------------------------------------------
# Wrapper: SortedGRU.forward equivalent.
#   inputs: (B, T, I) batch-first, input_lens: (B,) or None,
#   w_ih: (3H, I), w_hh: (3H, H), b_ih: (3H,), b_hh: (3H,)  (torch GRU layout)
#   last_hidden: (1, B, H) or None
# Returns (encoder_outputs (B, T, H), hidden (1, B, H)).
# ---------------------------------------------------------------------------
def sorted_gru_forward(inputs, input_lens, w_ih, w_hh, b_ih, b_hh, last_hidden=None):
    B, T, I = inputs.shape
    H = w_hh.shape[1]

    if input_lens is None:
        lens = jnp.full((B,), T, dtype=jnp.int32)
    else:
        lens = input_lens.astype(jnp.int32)
    lens2 = lens.reshape(B, 1)
    maxlen = jnp.max(lens).reshape(1, 1)

    if last_hidden is None:
        h0 = jnp.zeros((B, H), jnp.float32)
    else:
        h0 = last_hidden[0].astype(jnp.float32)

    # Gate-separated, pre-transposed weights: [r, z, n], each usable as x @ W^T.
    w_ih_g = jnp.transpose(w_ih.reshape(3, H, I), (0, 2, 1)).astype(jnp.float32)  # (3, I, H)
    w_hh_g = jnp.transpose(w_hh.reshape(3, H, H), (0, 2, 1)).astype(jnp.float32)  # (3, H, H)
    b_ih_g = b_ih.reshape(3, 1, H).astype(jnp.float32)
    b_hh_g = b_hh.reshape(3, 1, H).astype(jnp.float32)

    # ---- Stage 1: input projection for all timesteps in one tiled matmul kernel.
    x_tm = jnp.transpose(inputs, (1, 0, 2)).astype(jnp.float32)  # (T, B, I) time-major
    x_flat = x_tm.reshape(T * B, I)
    rows = T * B
    tile_r = _pick_row_tile(rows)

    gx_flat = pl.pallas_call(
        _in_proj_kernel,
        out_shape=jax.ShapeDtypeStruct((3, rows, H), jnp.float32),
        grid_spec=pltpu.PrefetchScalarGridSpec(
            num_scalar_prefetch=0,
            grid=(rows // tile_r,),
            in_specs=[
                pl.BlockSpec((tile_r, I), lambda i: (i, 0)),
                pl.BlockSpec((3, I, H), lambda i: (0, 0, 0)),   # weights resident
                pl.BlockSpec((3, 1, H), lambda i: (0, 0, 0)),   # bias resident
            ],
            out_specs=pl.BlockSpec((3, tile_r, H), lambda i: (0, i, 0)),
        ),
        compiler_params=pltpu.CompilerParams(
            dimension_semantics=("parallel",)),
    )(x_flat, w_ih_g, b_ih_g)
    gx_all = gx_flat.reshape(3, T, B, H)   # pure view reshape (row = t*B + b)

    # ---- Stage 2: sequential recurrence over time.
    out_tm, h_last = pl.pallas_call(
        _gru_recurrence_kernel,
        out_shape=(jax.ShapeDtypeStruct((T, B, H), inputs.dtype),
                   jax.ShapeDtypeStruct((B, H), jnp.float32)),
        grid_spec=pltpu.PrefetchScalarGridSpec(
            num_scalar_prefetch=0,
            grid=(T,),
            in_specs=[
                pl.BlockSpec((B, 1), lambda t: (0, 0)),              # lengths
                pl.BlockSpec((1, 1), lambda t: (0, 0)),              # max length
                pl.BlockSpec((3, 1, B, H), lambda t: (0, t, 0, 0)),  # x-gates for step t
                pl.BlockSpec((B, H), lambda t: (0, 0)),              # h0
                pl.BlockSpec((3, H, H), lambda t: (0, 0, 0)),        # W_hh^T resident
                pl.BlockSpec((3, 1, H), lambda t: (0, 0, 0)),        # b_hh resident
            ],
            out_specs=(
                pl.BlockSpec((1, B, H), lambda t: (t, 0, 0)),        # per-step outputs
                pl.BlockSpec((B, H), lambda t: (0, 0)),              # final hidden (resident)
            ),
        ),
        compiler_params=pltpu.CompilerParams(
            dimension_semantics=("arbitrary",)),   # sequential recurrence
    )(lens2, maxlen, gx_all, h0, w_hh_g, b_hh_g)

    encoder_outputs = jnp.transpose(out_tm, (1, 0, 2))   # back to batch-first (B, T, H)
    hidden = h_last[None].astype(inputs.dtype)           # (1, B, H)
    return encoder_outputs, hidden


# ---------------------------------------------------------------------------
# Pure-JAX reference (PyTorch GRU equations + pack/pad semantics).
# ---------------------------------------------------------------------------
def _reference_sorted_gru(inputs, input_lens, w_ih, w_hh, b_ih, b_hh, last_hidden=None):
    B, T, _ = inputs.shape
    H = w_hh.shape[1]
    P = jax.lax.Precision.HIGHEST
    W_ir, W_iz, W_in = jnp.split(w_ih, 3, axis=0)
    W_hr, W_hz, W_hn = jnp.split(w_hh, 3, axis=0)
    b_ir, b_iz, b_in = jnp.split(b_ih, 3)
    b_hr, b_hz, b_hn = jnp.split(b_hh, 3)
    h = jnp.zeros((B, H), jnp.float32) if last_hidden is None else last_hidden[0]
    max_len = int(jnp.max(input_lens))
    outs = []
    for t in range(T):
        x_t = inputs[:, t, :]
        r = jax.nn.sigmoid(jnp.dot(x_t, W_ir.T, precision=P) + b_ir
                           + jnp.dot(h, W_hr.T, precision=P) + b_hr)
        z = jax.nn.sigmoid(jnp.dot(x_t, W_iz.T, precision=P) + b_iz
                           + jnp.dot(h, W_hz.T, precision=P) + b_hz)
        n = jnp.tanh(jnp.dot(x_t, W_in.T, precision=P) + b_in
                     + r * (jnp.dot(h, W_hn.T, precision=P) + b_hn))
        h_new = (1.0 - z) * n + z * h
        valid = (t < input_lens)[:, None]
        h = jnp.where(valid, h_new, h)
        if t >= max_len:
            outs.append(jnp.full((B, H), 1e-7, jnp.float32))
        else:
            outs.append(jnp.where(valid, h_new, 0.0))
    return jnp.stack(outs, axis=1), h[None]


if __name__ == "__main__":
    key = jax.random.PRNGKey(0)
    batch, seq, in_dim, hidden = 4, 8, 16, 32

    k_x, k_wih, k_whh, k_bih, k_bhh = jax.random.split(key, 5)
    stdv = 1.0 / (hidden ** 0.5)
    inputs = jax.random.normal(k_x, (batch, seq, in_dim), dtype=jnp.float32)
    w_ih = jax.random.uniform(k_wih, (3 * hidden, in_dim), jnp.float32, -stdv, stdv)
    w_hh = jax.random.uniform(k_whh, (3 * hidden, hidden), jnp.float32, -stdv, stdv)
    b_ih = jax.random.uniform(k_bih, (3 * hidden,), jnp.float32, -stdv, stdv)
    b_hh = jax.random.uniform(k_bhh, (3 * hidden,), jnp.float32, -stdv, stdv)

    # max(len) < seq exercises the module's appended 1e-07 tail.
    input_lens = jnp.array([6, 3, 7, 5], dtype=jnp.int32)

    out, hid = sorted_gru_forward(inputs, input_lens, w_ih, w_hh, b_ih, b_hh)
    out = jax.block_until_ready(out)
    hid = jax.block_until_ready(hid)

    ref_out, ref_hid = _reference_sorted_gru(inputs, input_lens, w_ih, w_hh, b_ih, b_hh)

    assert out.shape == (batch, seq, hidden), out.shape
    assert hid.shape == (1, batch, hidden), hid.shape
    assert jnp.allclose(out, ref_out, atol=2e-3, rtol=2e-3), "encoder_outputs mismatch"
    assert jnp.allclose(hid, ref_hid, atol=2e-3, rtol=2e-3), "hidden mismatch"

    print("KERNEL_OK")
</pallas_src>

<mosaic_0001>
module attributes {stable_mosaic.version = 11 : i64} {
  func.func @_in_proj_kernel(%arg0: i32, %arg1: memref<32x16xf32, #tpu.memory_space<vmem>>, %arg2: memref<3x16x32xf32, #tpu.memory_space<vmem>>, %arg3: memref<3x1x32xf32, #tpu.memory_space<vmem>>, %arg4: memref<3x32x32xf32, #tpu.memory_space<vmem>>) attributes {dimension_semantics = [#tpu.dimension_semantics<parallel>], iteration_bounds = array<i64: 1>, scalar_prefetch = 0 : i64, scratch_operands = 0 : i64, tpu.core_type = #tpu.core_type<tc>, window_params = [{transform_indices = @transform_0, window_bounds = array<i64: 32, 16>}, {pipeline_mode = #tpu.pipeline_mode<synchronous>, transform_indices = @transform_1, window_bounds = array<i64: 3, 16, 32>}, {pipeline_mode = #tpu.pipeline_mode<synchronous>, transform_indices = @transform_2, window_bounds = array<i64: 3, 1, 32>}, {transform_indices = @transform_3, window_bounds = array<i64: 3, 32, 32>}]} {
    %c0 = arith.constant 0 : index
    %c0_0 = arith.constant 0 : index
    %0 = vector.load %arg1[%c0, %c0_0] : memref<32x16xf32, #tpu.memory_space<vmem>>, vector<32x16xf32>
    %c0_1 = arith.constant 0 : index
    %c0_2 = arith.constant 0 : index
    %c0_3 = arith.constant 0 : index
    %1 = vector.load %arg2[%c0_1, %c0_2, %c0_3] : memref<3x16x32xf32, #tpu.memory_space<vmem>>, vector<1x16x32xf32>
    %2 = vector.shape_cast %1 : vector<1x16x32xf32> to vector<16x32xf32>
    %cst = arith.constant dense<0.000000e+00> : vector<32x32xf32>
    %3 = tpu.matmul %0, %2, %cst {dimension_numbers = #tpu.dot_dimension_numbers<[1], [0], [0], [1], [0, 0, 1, 1], [], []>} : vector<32x16xf32>, vector<16x32xf32>, vector<32x32xf32> -> vector<32x32xf32>
    %c0_4 = arith.constant 0 : index
    %c0_5 = arith.constant 0 : index
    %c0_6 = arith.constant 0 : index
    %4 = vector.load %arg3[%c0_4, %c0_5, %c0_6] : memref<3x1x32xf32, #tpu.memory_space<vmem>>, vector<1x1x32xf32>
    %5 = vector.shape_cast %4 : vector<1x1x32xf32> to vector<1x32xf32>
    %6 = vector.broadcast %5 : vector<1x32xf32> to vector<32x32xf32>
    %7 = arith.addf %3, %6 : vector<32x32xf32>
    %c0_7 = arith.constant 0 : index
    %c0_8 = arith.constant 0 : index
    %c0_9 = arith.constant 0 : index
    %8 = vector.load %arg4[%c0_7, %c0_8, %c0_9] : memref<3x32x32xf32, #tpu.memory_space<vmem>>, vector<1x32x32xf32>
    %9 = vector.shape_cast %8 : vector<1x32x32xf32> to vector<32x32xf32>
    %10 = vector.shape_cast %7 : vector<32x32xf32> to vector<1x32x32xf32>
    tpu.vector_store %arg4[%c0_7, %c0_8, %c0_9], %10 {strides = array<i32>} : memref<3x32x32xf32, #tpu.memory_space<vmem>>, vector<1x32x32xf32>,
    %c1 = arith.constant 1 : index
    %c0_10 = arith.constant 0 : index
    %c0_11 = arith.constant 0 : index
    %11 = vector.load %arg2[%c1, %c0_10, %c0_11] : memref<3x16x32xf32, #tpu.memory_space<vmem>>, vector<1x16x32xf32>
    %12 = vector.shape_cast %11 : vector<1x16x32xf32> to vector<16x32xf32>
    %cst_12 = arith.constant dense<0.000000e+00> : vector<32x32xf32>
    %13 = tpu.matmul %0, %12, %cst_12 {dimension_numbers = #tpu.dot_dimension_numbers<[1], [0], [0], [1], [0, 0, 1, 1], [], []>} : vector<32x16xf32>, vector<16x32xf32>, vector<32x32xf32> -> vector<32x32xf32>
    %c1_13 = arith.constant 1 : index
    %c0_14 = arith.constant 0 : index
    %c0_15 = arith.constant 0 : index
    %14 = vector.load %arg3[%c1_13, %c0_14, %c0_15] : memref<3x1x32xf32, #tpu.memory_space<vmem>>, vector<1x1x32xf32>
    %15 = vector.shape_cast %14 : vector<1x1x32xf32> to vector<1x32xf32>
    %16 = vector.broadcast %15 : vector<1x32xf32> to vector<32x32xf32>
    %17 = arith.addf %13, %16 : vector<32x32xf32>
    %c1_16 = arith.constant 1 : index
    %c0_17 = arith.constant 0 : index
    %c0_18 = arith.constant 0 : index
    %18 = vector.load %arg4[%c1_16, %c0_17, %c0_18] : memref<3x32x32xf32, #tpu.memory_space<vmem>>, vector<1x32x32xf32>
    %19 = vector.shape_cast %18 : vector<1x32x32xf32> to vector<32x32xf32>
    %20 = vector.shape_cast %17 : vector<32x32xf32> to vector<1x32x32xf32>
    tpu.vector_store %arg4[%c1_16, %c0_17, %c0_18], %20 {strides = array<i32>} : memref<3x32x32xf32, #tpu.memory_space<vmem>>, vector<1x32x32xf32>,
    %c2 = arith.constant 2 : index
    %c0_19 = arith.constant 0 : index
    %c0_20 = arith.constant 0 : index
    %21 = vector.load %arg2[%c2, %c0_19, %c0_20] : memref<3x16x32xf32, #tpu.memory_space<vmem>>, vector<1x16x32xf32>
    %22 = vector.shape_cast %21 : vector<1x16x32xf32> to vector<16x32xf32>
    %cst_21 = arith.constant dense<0.000000e+00> : vector<32x32xf32>
    %23 = tpu.matmul %0, %22, %cst_21 {dimension_numbers = #tpu.dot_dimension_numbers<[1], [0], [0], [1], [0, 0, 1, 1], [], []>} : vector<32x16xf32>, vector<16x32xf32>, vector<32x32xf32> -> vector<32x32xf32>
    %c2_22 = arith.constant 2 : index
    %c0_23 = arith.constant 0 : index
    %c0_24 = arith.constant 0 : index
    %24 = vector.load %arg3[%c2_22, %c0_23, %c0_24] : memref<3x1x32xf32, #tpu.memory_space<vmem>>, vector<1x1x32xf32>
    %25 = vector.shape_cast %24 : vector<1x1x32xf32> to vector<1x32xf32>
    %26 = vector.broadcast %25 : vector<1x32xf32> to vector<32x32xf32>
    %27 = arith.addf %23, %26 : vector<32x32xf32>
    %c2_25 = arith.constant 2 : index
    %c0_26 = arith.constant 0 : index
    %c0_27 = arith.constant 0 : index
    %28 = vector.load %arg4[%c2_25, %c0_26, %c0_27] : memref<3x32x32xf32, #tpu.memory_space<vmem>>, vector<1x32x32xf32>
    %29 = vector.shape_cast %28 : vector<1x32x32xf32> to vector<32x32xf32>
    %30 = vector.shape_cast %27 : vector<32x32xf32> to vector<1x32x32xf32>
    tpu.vector_store %arg4[%c2_25, %c0_26, %c0_27], %30 {strides = array<i32>} : memref<3x32x32xf32, #tpu.memory_space<vmem>>, vector<1x32x32xf32>,
    return
  }
  func.func @transform_0(%arg0: i32) -> (i32, i32) {
    %c0_i32 = arith.constant 0 : i32
    %c0_i32_0 = arith.constant 0 : i32
    return %arg0, %c0_i32 : i32, i32
  }
  func.func @transform_1(%arg0: i32) -> (i32, i32, i32) {
    %c0_i32 = arith.constant 0 : i32
    %c0_i32_0 = arith.constant 0 : i32
    %c0_i32_1 = arith.constant 0 : i32
    %c0_i32_2 = arith.constant 0 : i32
    return %c0_i32, %c0_i32_0, %c0_i32_1 : i32, i32, i32
  }
  func.func @transform_2(%arg0: i32) -> (i32, i32, i32) {
    %c0_i32 = arith.constant 0 : i32
    %c0_i32_0 = arith.constant 0 : i32
    %c0_i32_1 = arith.constant 0 : i32
    %c0_i32_2 = arith.constant 0 : i32
    return %c0_i32, %c0_i32_0, %c0_i32_1 : i32, i32, i32
  }
  func.func @transform_3(%arg0: i32) -> (i32, i32, i32) {
    %c0_i32 = arith.constant 0 : i32
    %c0_i32_0 = arith.constant 0 : i32
    %c0_i32_1 = arith.constant 0 : i32
    return %c0_i32, %arg0, %c0_i32_0 : i32, i32, i32
  }
}

</mosaic_0001>

<bundles_post_ra>
// kernel: tpu_custom_call.1
= control target key start
LH: loop header
LB: loop body
LE: loop exit
PB: predicated region body
PF: predicated region fallthrough
CT: control target
= control target key end

     0   :  { %vm28_vm0 = vcmask 130048   ;;  %s557_s0 = inlined_call_operand.vmem [shape: f32[32,16], index: 0, kind: input, shape index: {}]   ;;  %s558_s1 = inlined_call_operand.vmem [shape: f32[3,16,32], index: 1, kind: input, shape index: {}]   ;;  %s559_s2 = inlined_call_operand.vmem [shape: f32[3,1,32], index: 2, kind: input, shape index: {}]   ;;  %s560_s3 = inlined_call_operand.hbm [shape: f32[3,32,32], index: 3, kind: output, shape index: {}]  }
   0x1   :  { %v19_v0 = vld [vmem:[%s558_s1] sm:$0xff]  ;;  %v20_v1 = vld [vmem:[%s558_s1 + $0x8] sm:$0xff]  ;;  %v17_v4 = vld [vmem:[%s557_s0 + $0x10] sm:$0xff] }
   0x2   :  { %v15_v2 = vld [vmem:[%s557_s0] sm:$0xff]  ;;  %v418_v3 = vpack.c.bf16 %v20_v1, %v19_v0  ;;  %395 = vmatprep.mubr.msk.f32.mxu1 %vm28_vm0, %v17_v4  ;;  %v354_v5 = vld [vmem:[%s558_s1 + $0x10] sm:$0xff]  ;;  %v355_v6 = vld [vmem:[%s558_s1 + $0x18] sm:$0xff] }
   0x3   :  { %392 = vmatprep.mubr.msk.f32.mxu0 %vm28_vm0, %v15_v2  ;;  %v362_v7 = vld [vmem:[%s558_s1 + $0x20] sm:$0xff]  ;;  %v422_v8 = vpack.c.bf16 %v355_v6, %v354_v5  ;;  %v363_v9 = vld [vmem:[%s558_s1 + $0x28] sm:$0xff] }
   0x4   :  { %419 = vmatprep.subr.bf16.mxu0 %v418_v3  ;;  %430 = vmatprep.subr.bf16.mxu1 %v418_v3 }
   0x5   :  { %8 = vsyncpa [#allocation3], 0  ;;  %421 = vmatpush3.bf16.msra.mxu0 %v418_v3  ;;  %431 = vmatpush3.bf16.msra.mxu1 %v418_v3  ;;  %v16_v10 = vld [vmem:[%s557_s0 + $0x8] sm:$0xff]  ;;  %v18_v11 = vld [vmem:[%s557_s0 + $0x18] sm:$0xff]  ;;  %v426_v12 = vpack.c.bf16 %v363_v9, %v362_v7  ;;  %vm126_vm1 = vcmask 261120   ;;  %s459_s9 = smov [#allocation2]  }
   0x6   :  { %423 = vmatprep.subr.bf16.mxu1 %v422_v8  ;;  %v349_v13 = vld [vmem:[%s559_s2] ss:$0 sm:$0xff]  ;;  %v357_v22 = vld [vmem:[%s559_s2 + $0x1] ss:$0 sm:$0xff]  ;;  %v365_v23 = vld [vmem:[%s559_s2 + $0x2] ss:$0 sm:$0xff] }
   0x7   :  { %427 = vmatprep.subr.bf16.mxu0 %v426_v12  ;;  %s338_s10 = sshll.u32 %s459_s9, 4  ;;  %s339_s10 = int_to_ptr.vmem [resolvable:$true] %s338_s10 }
   0x8   :  { %393 = vmatmul.mubr.msk.f32.vlgmr.msra.gmra.mrb[0].mxu0 %vm28_vm0, %v16_v10  ;;  %396 = vmatmul.mubr.msk.f32.vlgmr.msra.gmra.mrb[0].mxu1 %vm28_vm0, %v18_v11  ;;  %s435_s2 = scalar_lea.vmem %s339_s10, 1536  ;;  %p440_p1 = scmp.lt.s32.totalorder %s339_s10, %s339_s10 }
   0x9   :  { %425 = vmatpush3.bf16.msra.mxu1 %v422_v8  ;;  %429 = vmatpush3.bf16.msra.mxu0 %v426_v12  ;;  %p436_p0 = scmp.ne.s32.totalorder %s339_s10, %s435_s2  ;;  %p441_p2 = scmp.lt.s32.totalorder %s435_s2, %s435_s2 }
   0xa   :  { %402 = vmatprep.mubr.msk.f32.mxu1 %vm28_vm0, %v15_v2  ;;  %412 = vmatprep.mubr.msk.f32.mxu0 %vm28_vm0, %v15_v2 }
   0xb   :  { %p442_p3 = por %p441_p2, %p440_p1 }
   0xc   :  { %403 = vmatmul.mubr.msk.f32.vlgmr.msra.gmra.mrb[2].mxu1 %vm28_vm0, %v16_v10  ;;  %413 = vmatmul.mubr.msk.f32.vlgmr.msra.gmra.mrb[2].mxu0 %vm28_vm0, %v16_v10 }
   0xd   :  { %405 = vmatprep.mubr.msk.f32.mxu1 %vm28_vm0, %v17_v4  ;;  %415 = vmatprep.mubr.msk.f32.mxu0 %vm28_vm0, %v17_v4  ;;  %p443_p4 = pnand %p442_p3, %p436_p0 }
  0x10   :  { %406 = vmatmul.mubr.msk.f32.gmra.mrb[4].mxu1 %vm28_vm0, %v18_v11  ;;  %416 = vmatmul.mubr.msk.f32.gmra.mrb[4].mxu0 %vm28_vm0, %v18_v11 }
  0xdb   :  { %v394_v14 = vpop.f32.mrb[0].mxu0  ;;  %v397_v15 = vpop.f32.mrb[0].mxu1 }
  0xdc   :  { %v113_v16 = vadd.f32 %v394_v14, %v349_v13  ;;  %v123_v17 = vadd.f32 %v397_v15, %v349_v13  ;;  %v107_v18 = vpop.f32.mrb[1].mxu0  ;;  %v117_v19 = vpop.f32.mrb[1].mxu1 }
  0xdd   :  { %v108_v20 = vadd.f32 %v349_v13, %v107_v18  ;;  %v118_v21 = vadd.f32 %v349_v13, %v117_v19 }
  0xde   :  { %128 = vst.msk [vmem:[#allocation2 + $0x8] sm:$0xff] %vm126_vm1, %v113_v16  ;;  %130 = vst.msk [vmem:[#allocation2 + $0x18] sm:$0xff] %vm126_vm1, %v123_v17 }
  0xdf   :  { %127 = vst.msk [vmem:[#allocation2] sm:$0xff] %vm126_vm1, %v108_v20  ;;  %129 = vst.msk [vmem:[#allocation2 + $0x10] sm:$0xff] %vm126_vm1, %v118_v21  ;;  %v404_v24 = vpop.f32.mrb[2].mxu1  ;;  %v414_v25 = vpop.f32.mrb[2].mxu0 }
  0xe0   :  { %v214_v26 = vadd.f32 %v404_v24, %v357_v22  ;;  %v315_v27 = vadd.f32 %v414_v25, %v365_v23  ;;  %v208_v28 = vpop.f32.mrb[3].mxu1  ;;  %v309_v29 = vpop.f32.mrb[3].mxu0 }
  0xe1   :  { %v209_v30 = vadd.f32 %v357_v22, %v208_v28  ;;  %v310_v31 = vadd.f32 %v365_v23, %v309_v29 }
  0xe2   :  { %229 = vst.msk [vmem:[#allocation2 + $0x28] sm:$0xff] %vm126_vm1, %v214_v26  ;;  %330 = vst.msk [vmem:[#allocation2 + $0x48] sm:$0xff] %vm126_vm1, %v315_v27 }
  0xe3   :  { %228 = vst.msk [vmem:[#allocation2 + $0x20] sm:$0xff] %vm126_vm1, %v209_v30  ;;  %329 = vst.msk [vmem:[#allocation2 + $0x40] sm:$0xff] %vm126_vm1, %v310_v31  ;;  %v407_v32 = vpop.f32.mrb[4].mxu1  ;;  %v417_v33 = vpop.f32.mrb[4].mxu0 }
  0xe4   :  { %v224_v34 = vadd.f32 %v407_v32, %v357_v22  ;;  %v325_v35 = vadd.f32 %v417_v33, %v365_v23  ;;  %v218_v36 = vpop.f32.mrb[5].mxu1  ;;  %v319_v37 = vpop.f32.mrb[5].mxu0 }
  0xe5   :  { %v219_v38 = vadd.f32 %v357_v22, %v218_v36  ;;  %v320_v39 = vadd.f32 %v365_v23, %v319_v37 }
  0xe6   :  { %231 = vst.msk [vmem:[#allocation2 + $0x38] sm:$0xff] %vm126_vm1, %v224_v34  ;;  %332 = vst.msk [vmem:[#allocation2 + $0x58] sm:$0xff] %vm126_vm1, %v325_v35 }
  0xe7   :  { %230 = vst.msk [vmem:[#allocation2 + $0x30] sm:$0xff] %vm126_vm1, %v219_v38  ;;  %331 = vst.msk [vmem:[#allocation2 + $0x50] sm:$0xff] %vm126_vm1, %v320_v39 }
  0xe8   :  { %446 = shalt.err (!%p443_p4)
}
  0xe9   :  { %s447_s13 = scalar_lea.hbm %s560_s3, 1536 }
  0xea   :  { %p448_p5 = scmp.ne.s32.totalorder %s560_s3, %s447_s13  ;;  %p451_p6 = scmp.lt.u32.totalorder %s447_s13, %s560_s3 }
  0xec   :  { %p453_p7 = pnand %p451_p6, %p448_p5 }
  0xee   :  { %456 = shalt.err (!%p453_p7)
}
  0xef   :  { %s460_s18 = smov 128   ;;  %s461_s19 = smov 8  }
  0xf0   :  { %344 = dma.vmem_to_hbm [thread:$0]  %s339_s10, 1536, %s560_s3, [#allocation3], %s460_s18, %s460_s18, %s461_s19  }
  0xf1   :  { %457 = dma.done.wait [#allocation3], 1536  }
  0xf2   :  { %458 = vsyncadd [#allocation3], 4294965760 }
  0xf3   :  { %348 = vsyncpa [#allocation3], 1 }

</bundles_post_ra>
